<compile_context>
chip_gen: v6e
topology: v6e:2x2x1
jax: 0.10.0
libtpu: 0.0.40
codegen_flags: <defaults>
</compile_context>

<pallas_src>
import functools

import jax
import jax.numpy as jnp
from jax import lax
from jax.experimental import pallas as pl
from jax.experimental.pallas import tpu as pltpu

_LANE = 128
_SUBLANE = 8


def _round_up(x, m):
    return ((x + m - 1) // m) * m


def _vmem_capacity_bytes():
    # Query per-generation VMEM so tiles are re-derived for v7x's 64 MiB.
    try:
        info = pltpu.get_tpu_info()
        cap = getattr(info, "vmem_capacity_bytes", None)
        if cap:
            return int(cap)
    except Exception:
        pass
    return 64 * 1024 * 1024  # conservative fallback (v7x per-TC VMEM)


def _triplet_kernel(a_ref, p_ref, n_ref, out_ref, *, margin, batch, block_rows):
    a = a_ref[...].astype(jnp.float32)
    p = p_ref[...].astype(jnp.float32)
    n = n_ref[...].astype(jnp.float32)

    dp = a - p
    dn = a - n
    d_pos = jnp.sum(dp * dp, axis=1, keepdims=True)      # (TB, 1)
    d_neg = jnp.sum(dn * dn, axis=1, keepdims=True)      # (TB, 1)
    losses = jnp.maximum(d_pos - d_neg + margin, 0.0)     # (TB, 1)

    # Zero out padded batch rows (global row index >= batch).
    row = (pl.program_id(0) * block_rows
           + lax.broadcasted_iota(jnp.int32, (block_rows, 1), 0))
    losses = jnp.where(row < batch, losses, 0.0)

    # Per-tile partial sum, written to a lane-dense (1, 8, 128) slab
    # (unmasked vector stores; final reduction happens outside the kernel).
    partial = jnp.sum(losses)
    out_ref[...] = jnp.broadcast_to(partial, out_ref.shape)


def triplet_loss(anchor, positive, negative, margin=1.0, block_rows=None):
    assert anchor.shape == positive.shape == negative.shape
    assert anchor.ndim == 2
    B, D = anchor.shape

    # Lane-dense feature dim.
    D_pad = _round_up(max(D, _LANE), _LANE)

    # Batch tile: 3 f32 inputs x 2 pipeline buffers must fit comfortably in VMEM.
    if block_rows is None:
        budget = _vmem_capacity_bytes() // 4
        bytes_per_row = 3 * 2 * D_pad * 4
        tb = max(_SUBLANE, min(1024, budget // bytes_per_row))
    else:
        tb = max(_SUBLANE, int(block_rows))
    tb -= tb % _SUBLANE
    tb = min(tb, _round_up(B, _SUBLANE))

    B_pad = _round_up(B, tb)
    num_tiles = B_pad // tb

    def pad(x):
        x = x.astype(jnp.float32)
        return jnp.pad(x, ((0, B_pad - B), (0, D_pad - D)))

    a, p, n = pad(anchor), pad(positive), pad(negative)

    kernel = functools.partial(
        _triplet_kernel, margin=float(margin), batch=B, block_rows=tb)

    in_spec = pl.BlockSpec((tb, D_pad), lambda i: (i, 0))
    vmem_limit = int(min(_vmem_capacity_bytes() // 2, 64 * 1024 * 1024))

    partials = pl.pallas_call(
        kernel,
        out_shape=jax.ShapeDtypeStruct((num_tiles, _SUBLANE, _LANE), jnp.float32),
        grid=(num_tiles,),
        in_specs=[in_spec, in_spec, in_spec],
        out_specs=pl.BlockSpec((1, _SUBLANE, _LANE), lambda i: (i, 0, 0)),
        compiler_params=pltpu.CompilerParams(
            dimension_semantics=("parallel",),
            vmem_limit_bytes=vmem_limit,
        ),
    )(a, p, n)

    return jnp.sum(partials[:, 0, 0]) / B


def triplet_loss_ref(anchor, positive, negative, margin=1.0):
    dp = jnp.sum((anchor - positive) ** 2, axis=1)
    dn = jnp.sum((anchor - negative) ** 2, axis=1)
    return jnp.mean(jnp.maximum(dp - dn + margin, 0.0))


if __name__ == "__main__":
    # Small shape matching the module's (batch, feature) convention.
    k1, k2, k3 = jax.random.split(jax.random.PRNGKey(0), 3)
    B, D = 8, 32
    anchor = jax.random.normal(k1, (B, D), dtype=jnp.float32)
    positive = jax.random.normal(k2, (B, D), dtype=jnp.float32)
    negative = jax.random.normal(k3, (B, D), dtype=jnp.float32)

    out = jax.block_until_ready(triplet_loss(anchor, positive, negative, margin=1.0))
    ref = triplet_loss_ref(anchor, positive, negative, margin=1.0)
    assert jnp.allclose(out, ref, rtol=1e-4, atol=1e-4), (out, ref)

    # Multi-tile path: non-multiple batch/feature sizes exercise padding + masking.
    k4, k5, k6 = jax.random.split(jax.random.PRNGKey(1), 3)
    B2, D2 = 300, 96
    a2 = jax.random.normal(k4, (B2, D2), dtype=jnp.float32)
    p2 = jax.random.normal(k5, (B2, D2), dtype=jnp.float32)
    n2 = jax.random.normal(k6, (B2, D2), dtype=jnp.float32)
    out2 = jax.block_until_ready(triplet_loss(a2, p2, n2, margin=0.5, block_rows=128))
    ref2 = triplet_loss_ref(a2, p2, n2, margin=0.5)
    assert jnp.allclose(out2, ref2, rtol=1e-4, atol=1e-4), (out2, ref2)

    print("KERNEL_OK")
</pallas_src>

<mosaic_0001>
module attributes {stable_mosaic.version = 11 : i64} {
  func.func @_triplet_kernel(%arg0: i32, %arg1: memref<8x128xf32, #tpu.memory_space<vmem>>, %arg2: memref<8x128xf32, #tpu.memory_space<vmem>>, %arg3: memref<8x128xf32, #tpu.memory_space<vmem>>, %arg4: memref<1x8x128xf32, #tpu.memory_space<vmem>>) attributes {dimension_semantics = [#tpu.dimension_semantics<parallel>], iteration_bounds = array<i64: 1>, scalar_prefetch = 0 : i64, scratch_operands = 0 : i64, tpu.core_type = #tpu.core_type<tc>, window_params = [{transform_indices = @transform_0, window_bounds = array<i64: 8, 128>}, {transform_indices = @transform_1, window_bounds = array<i64: 8, 128>}, {transform_indices = @transform_2, window_bounds = array<i64: 8, 128>}, {transform_indices = @transform_3, window_bounds = array<i64: 1, 8, 128>}]} {
    %c0 = arith.constant 0 : index
    %c0_0 = arith.constant 0 : index
    %0 = vector.load %arg1[%c0, %c0_0] : memref<8x128xf32, #tpu.memory_space<vmem>>, vector<8x128xf32>
    %c0_1 = arith.constant 0 : index
    %c0_2 = arith.constant 0 : index
    %1 = vector.load %arg2[%c0_1, %c0_2] : memref<8x128xf32, #tpu.memory_space<vmem>>, vector<8x128xf32>
    %c0_3 = arith.constant 0 : index
    %c0_4 = arith.constant 0 : index
    %2 = vector.load %arg3[%c0_3, %c0_4] : memref<8x128xf32, #tpu.memory_space<vmem>>, vector<8x128xf32>
    %3 = arith.subf %0, %1 : vector<8x128xf32>
    %4 = arith.subf %0, %2 : vector<8x128xf32>
    %5 = arith.mulf %3, %3 : vector<8x128xf32>
    %cst = arith.constant dense<0.000000e+00> : vector<8xf32>
    %6 = vector.multi_reduction <add>, %5, %cst [1] : vector<8x128xf32> to vector<8xf32>
    %7 = vector.shape_cast %6 : vector<8xf32> to vector<8x1xf32>
    %8 = arith.mulf %4, %4 : vector<8x128xf32>
    %cst_5 = arith.constant dense<0.000000e+00> : vector<8xf32>
    %9 = vector.multi_reduction <add>, %8, %cst_5 [1] : vector<8x128xf32> to vector<8xf32>
    %10 = vector.shape_cast %9 : vector<8xf32> to vector<8x1xf32>
    %11 = arith.subf %7, %10 : vector<8x1xf32>
    %cst_6 = arith.constant 1.000000e+00 : f32
    %12 = vector.broadcast %cst_6 : f32 to vector<8x1xf32>
    %13 = arith.addf %11, %12 : vector<8x1xf32>
    %cst_7 = arith.constant 0.000000e+00 : f32
    %14 = vector.broadcast %cst_7 : f32 to vector<8x1xf32>
    %15 = arith.maximumf %13, %14 : vector<8x1xf32>
    %c8_i32 = arith.constant 8 : i32
    %16 = arith.muli %arg0, %c8_i32 : i32
    %17 = tpu.iota {dimensions = array<i32: 0>} : vector<8x1xi32>
    %18 = vector.broadcast %16 : i32 to vector<8x1xi32>
    %19 = arith.addi %18, %17 : vector<8x1xi32>
    %c8_i32_8 = arith.constant 8 : i32
    %20 = vector.broadcast %c8_i32_8 : i32 to vector<8x1xi32>
    %21 = arith.cmpi slt, %19, %20 : vector<8x1xi32>
    %cst_9 = arith.constant 0.000000e+00 : f32
    %22 = vector.broadcast %cst_9 : f32 to vector<8x1xf32>
    %23 = arith.select %21, %15, %22 : vector<8x1xi1>, vector<8x1xf32>
    %24 = vector.shape_cast %23 : vector<8x1xf32> to vector<1x8x1xf32>
    %cst_10 = arith.constant dense<0.000000e+00> : vector<1xf32>
    %25 = vector.multi_reduction <add>, %24, %cst_10 [1, 2] : vector<1x8x1xf32> to vector<1xf32>
    %26 = vector.shape_cast %25 : vector<1xf32> to vector<1x1x1xf32>
    %27 = vector.extract %26[0, 0, 0] : f32 from vector<1x1x1xf32>
    %28 = vector.broadcast %27 : f32 to vector<1x8x128xf32>
    %c0_11 = arith.constant 0 : index
    %c0_12 = arith.constant 0 : index
    %c0_13 = arith.constant 0 : index
    %29 = vector.load %arg4[%c0_11, %c0_12, %c0_13] : memref<1x8x128xf32, #tpu.memory_space<vmem>>, vector<1x8x128xf32>
    tpu.vector_store %arg4[%c0_11, %c0_12, %c0_13], %28 {strides = array<i32>} : memref<1x8x128xf32, #tpu.memory_space<vmem>>, vector<1x8x128xf32>,
    return
  }
  func.func @transform_0(%arg0: i32) -> (i32, i32) {
    %c0_i32 = arith.constant 0 : i32
    %c0_i32_0 = arith.constant 0 : i32
    return %arg0, %c0_i32 : i32, i32
  }
  func.func @transform_1(%arg0: i32) -> (i32, i32) {
    %c0_i32 = arith.constant 0 : i32
    %c0_i32_0 = arith.constant 0 : i32
    return %arg0, %c0_i32 : i32, i32
  }
  func.func @transform_2(%arg0: i32) -> (i32, i32) {
    %c0_i32 = arith.constant 0 : i32
    %c0_i32_0 = arith.constant 0 : i32
    return %arg0, %c0_i32 : i32, i32
  }
  func.func @transform_3(%arg0: i32) -> (i32, i32, i32) {
    %c0_i32 = arith.constant 0 : i32
    %c0_i32_0 = arith.constant 0 : i32
    %c0_i32_1 = arith.constant 0 : i32
    return %arg0, %c0_i32, %c0_i32_0 : i32, i32, i32
  }
}

</mosaic_0001>

<bundles_post_ra>
// kernel: tpu_custom_call.1
= control target key start
LH: loop header
LB: loop body
LE: loop exit
PB: predicated region body
PF: predicated region fallthrough
CT: control target
= control target key end

     0   :  { %8 = vsyncpa [#allocation3], 0  ;;  %s228_s0 = inlined_call_operand.hbm [shape: f32[8,128], index: 0, kind: input, shape index: {}]   ;;  %s229_s1 = inlined_call_operand.hbm [shape: f32[8,128], index: 1, kind: input, shape index: {}]   ;;  %s230_s2 = inlined_call_operand.hbm [shape: f32[8,128], index: 2, kind: input, shape index: {}]   ;;  %s231_s3 = inlined_call_operand.hbm [shape: f32[1,8,128], index: 3, kind: output, shape index: {}]  }
   0x1   :  { %9 = vsyncpa [#allocation6], 0 }
   0x2   :  { %10 = vsyncpa [#allocation4], 0  ;;  %s192_s12 = smov [#allocation5]   ;;  %s193_s14 = smov [#allocation2]  }
   0x3   :  { %s27_s13 = sshll.u32 %s192_s12, 4  ;;  %s17_s15 = sshll.u32 %s193_s14, 4  ;;  %s28_s13 = int_to_ptr.vmem [resolvable:$true] %s27_s13  ;;  %s18_s15 = int_to_ptr.vmem [resolvable:$true] %s17_s15 }
   0x4   :  { %s114_s16 = scalar_lea.vmem %s28_s13, 128  ;;  %p119_p1 = scmp.lt.s32.totalorder %s28_s13, %s28_s13 }
   0x5   :  { %p115_p0 = scmp.ne.s32.totalorder %s28_s13, %s114_s16  ;;  %p120_p2 = scmp.lt.s32.totalorder %s114_s16, %s114_s16 }
   0x7   :  { %p121_p3 = por %p120_p2, %p119_p1 }
   0x9   :  { %p122_p4 = pnand %p121_p3, %p115_p0 }
   0xb   :  { %125 = shalt.err (!%p122_p4)
}
   0xc   :  { %30 = dma.hbm_to_vmem [thread:$0]  %s229_s1, 128, %s28_s13, [#allocation6]  }
   0xd   :  { %s134_s19 = scalar_lea.vmem %s18_s15, 128  ;;  %p139_p6 = scmp.lt.s32.totalorder %s18_s15, %s18_s15 }
   0xe   :  { %p135_p5 = scmp.ne.s32.totalorder %s18_s15, %s134_s19  ;;  %p140_p7 = scmp.lt.s32.totalorder %s134_s19, %s134_s19 }
  0x10   :  { %p141_p8 = por %p140_p7, %p139_p6 }
  0x12   :  { %p142_p9 = pnand %p141_p8, %p135_p5 }
  0x14   :  { %145 = shalt.err (!%p142_p9)
}
  0x15   :  { %20 = dma.hbm_to_vmem [thread:$0]  %s228_s0, 128, %s18_s15, [#allocation3]  }
  0x16   :  { %s194_s22 = smov [#allocation7]  }
  0x17   :  { %s37_s23 = sshll.u32 %s194_s22, 4  ;;  %s38_s23 = int_to_ptr.vmem [resolvable:$true] %s37_s23 }
  0x18   :  { %s154_s24 = scalar_lea.vmem %s38_s23, 128  ;;  %p159_p11 = scmp.lt.s32.totalorder %s38_s23, %s38_s23 }
  0x19   :  { %p155_p10 = scmp.ne.s32.totalorder %s38_s23, %s154_s24  ;;  %p160_p12 = scmp.lt.s32.totalorder %s154_s24, %s154_s24 }
  0x1b   :  { %p161_p13 = por %p160_p12, %p159_p11 }
  0x1d   :  { %p162_p0 = pnand %p161_p13, %p155_p10 }
  0x1f   :  { %165 = shalt.err (!%p162_p0)
}
  0x20   :  { %40 = dma.hbm_to_vmem [thread:$0]  %s230_s2, 128, %s38_s23, [#allocation6]  }
  0x21   :  { %186 = dma.done.wait [#allocation3], 128  }
  0x22   :  { %187 = vsyncadd [#allocation3], 4294967168 }
  0x23   :  { %188 = dma.done.wait [#allocation6], 256  }
  0x24   :  { %189 = vsyncadd [#allocation6], 4294967040  ;;  %v50_v0 = vld [vmem:[#allocation2] sm:$0xff]  ;;  %v51_v1 = vld [vmem:[#allocation5] sm:$0xff]  ;;  %vm71_vm0 = vcmask 7168   ;;  %s195_s0 = smov [#allocation8]  }
  0x25   :  { %v52_v2 = vld [vmem:[#allocation7] sm:$0xff]  ;;  %v53_v3 = vsub.f32 %v50_v0, %v51_v1  ;;  %s90_s2 = sshll.u32 %s195_s0, 4  ;;  %s91_s2 = int_to_ptr.vmem [resolvable:$true] %s90_s2 }
  0x26   :  { %v54_v4 = vsub.f32 %v50_v0, %v52_v2  ;;  %s166_s27 = scalar_lea.vmem %s91_s2, 128  ;;  %p171_p2 = scmp.lt.s32.totalorder %s91_s2, %s91_s2 }
  0x27   :  { %v55_v5 = vmul.f32 %v53_v3, %v53_v3  ;;  %p167_p1 = scmp.ne.s32.totalorder %s91_s2, %s166_s27  ;;  %p172_p3 = scmp.lt.s32.totalorder %s166_s27, %s166_s27 }
  0x28   :  { %v58_v6 = vmul.f32 %v54_v4, %v54_v4 }
  0x29   :  { %56 = vadd.xlane.f32.xlu0 %v55_v5  ;;  %p173_p4 = por %p172_p3, %p171_p2 }
  0x2b   :  { %p174_p5 = pnand %p173_p4, %p167_p1 }
  0x2d   :  { %59 = vadd.xlane.f32.xlu0 %v58_v6 }
  0xb2   :  { %v57_v7 = vpop.xlane.xlu0 %56 }
  0xb6   :  { %v60_v8 = vpop.xlane.xlu0 %59 }
  0xb7   :  { %v61_v9 = vsub.f32 %v57_v7, %v60_v8 }
  0xb9   :  { %v62_v10 = vadd.f32 1.0, %v61_v9 }
  0xbb   :  { %v63_v11 = vmax.f32 %v62_v10, 0.0 }
  0xbd   :  { %v72_v12 = vsel %vm71_vm0, %v63_v11, 0.0 }
  0xbe   :  { %73 = vadd.xlane.f32.xlu1 %v72_v12 }
 0x147   :  { %v74_v13 = vpop.xlane.xlu1 %73 }
 0x148   :  { %v75_v14 = vrot.slane %v74_v13, 4 }
 0x14a   :  { %v76_v15 = vadd.f32 %v75_v14, %v74_v13 }
 0x14c   :  { %v77_v16 = vrot.slane %v76_v15, 2 }
 0x14e   :  { %v78_v17 = vadd.f32 %v77_v16, %v76_v15 }
 0x150   :  { %v79_v18 = vrot.slane %v78_v17, 1 }
 0x152   :  { %v80_v19 = vadd.f32 %v79_v18, %v78_v17 }
 0x154   :  { %100 = vpush %v80_v19 }
 0x185   :  { %s101_s26 = spop %100 }
 0x186   :  { %v82_v20 = vstv %s101_s26 }
 0x187   :  { %83 = vst [vmem:[#allocation8] sm:$0xff] %v82_v20 }
 0x188   :  { %177 = shalt.err (!%p174_p5)
}
 0x189   :  { %93 = dma.vmem_to_hbm [thread:$0]  %s91_s2, 128, %s231_s3, [#allocation4]  }
 0x18a   :  { %190 = dma.done.wait [#allocation4], 128  }
 0x18b   :  { %191 = vsyncadd [#allocation4], 4294967168 }
 0x18c   :  { %97 = vsyncpa [#allocation3], 1 }
 0x18d   :  { %98 = vsyncpa [#allocation6], 1 }
 0x18e   :  { %99 = vsyncpa [#allocation4], 1 }

</bundles_post_ra>
